<compile_context>
chip_gen: v5e
topology: v5e:2x2
jax: 0.10.0
libtpu: 0.0.40
codegen_flags: <defaults>
</compile_context>

<pallas_src>
import functools

import jax
import jax.numpy as jnp
from jax.experimental import pallas as pl
from jax.experimental.pallas import tpu as pltpu


def _layernorm2d_kernel(x_ref, w_ref, b_ref, o_ref, *, eps, inv_c):
    # x_ref: (Bt, C, T)   w_ref/b_ref: (C, 1) float32   o_ref: (Bt, C, T)
    x = x_ref[...].astype(jnp.float32)
    w = w_ref[...][None]                                  # (1, C, 1)
    b = b_ref[...][None]                                  # (1, C, 1)

    # One-pass per-lane statistics over the channel axis (f32 accumulation):
    #   mean = sum(x)/C,  var = sum(x*x)/C - mean^2  (clamped at 0).
    mean = jnp.sum(x, axis=1, keepdims=True) * inv_c      # (Bt, 1, T)
    ex2 = jnp.sum(x * x, axis=1, keepdims=True) * inv_c   # (Bt, 1, T)
    var = jnp.maximum(ex2 - mean * mean, 0.0)
    inv = jax.lax.rsqrt(var + eps)                        # EUP rsqrt

    # Folded affine: (x - mean) * (w * inv) + b.
    o_ref[...] = ((x - mean) * (w * inv) + b).astype(o_ref.dtype)


def _vmem_capacity_bytes():
    try:
        cap = int(pltpu.get_tpu_info().vmem_capacity_bytes)
        if cap > 0:
            return cap
    except Exception:
        pass
    return 64 << 20  # conservative default (v7x per-TC VMEM)


def _round_down(x, m):
    return (x // m) * m


def _choose_blocks(B, C, HW, itemsize, vmem_cap_bytes, min_steps=4):
    """Return (batch rows per block, HW tile) honoring a chip-aware VMEM budget."""
    budget = max(vmem_cap_bytes // 5, 2 << 20)            # ~20% of VMEM for blocks
    # 2x input + 2x output (double-buffered) at native width + ~2 f32 temporaries.
    per_elem = 4 * itemsize + 8
    max_block_elems = max(budget // per_elem, 8 * 128)

    # Largest lane-dense HW tile (per batch row) the budget allows.
    max_T = max(_round_down(max_block_elems // max(C, 1), 128), 128)
    # Keep strided DMA rows >= ~2 KiB when HW allows (512 f32 / 1024 bf16).
    min_T = min(max(2048 // itemsize, 128), max_T)

    if HW > max_T:
        # Budget forces HW tiling.  Prefer an exact divisor near max_T; else
        # accept one masked remainder tile (per-lane stats keep it safe).
        if HW % 128 == 0:
            t = max_T
            lo = max(min_T, max_T // 2)
            while t >= lo:
                if HW % t == 0:
                    return 1, t
                t -= 128
        return 1, max_T

    # Whole HW fits in a single block.
    if B >= min_steps or HW < 2 * min_T:
        # Enough grid steps already, or HW too small to split profitably.
        bt = 1
        if B > min_steps:
            # Fold batch rows per block to amortize per-step overhead while
            # keeping >= min_steps grid steps.
            bt = min(B // min_steps, max(max_block_elems // max(C * HW, 1), 1))
            bt = max(bt, 1)
            while B % bt:
                bt -= 1
        return bt, HW

    # B is small and HW reasonably large: tile HW to expose >= min_steps grid
    # steps (pipelining everywhere, dual-TC sharding on v7x).
    want_tiles = pl.cdiv(min_steps, B)
    t = max(HW // want_tiles, min_T)
    t = max(_round_down(t, 128), 128)
    t = min(t, max_T)
    return 1, t


def layernorm2d(x, weight, bias, eps=1e-6):
    """x: (B, C, H, W). weight, bias: (C,). Matches PyTorch LayerNorm2d.forward."""
    B, C, H, W = x.shape
    HW = H * W
    itemsize = x.dtype.itemsize

    x2 = x.reshape(B, C, HW)
    w2 = weight.astype(jnp.float32).reshape(C, 1)
    b2 = bias.astype(jnp.float32).reshape(C, 1)

    vmem_cap = _vmem_capacity_bytes()
    bt, tile_hw = _choose_blocks(B, C, HW, itemsize, vmem_cap)
    num_tiles = pl.cdiv(HW, tile_hw)
    grid = (B // bt, num_tiles)

    kernel = functools.partial(_layernorm2d_kernel, eps=float(eps),
                               inv_c=float(1.0 / C))

    cost = pl.CostEstimate(
        flops=7 * B * C * HW,
        transcendentals=B * HW,
        bytes_accessed=2 * B * C * HW * itemsize + 2 * C * 4,
    )

    out = pl.pallas_call(
        kernel,
        out_shape=jax.ShapeDtypeStruct((B, C, HW), x.dtype),
        grid_spec=pltpu.PrefetchScalarGridSpec(
            num_scalar_prefetch=0,
            grid=grid,
            in_specs=[
                pl.BlockSpec((bt, C, tile_hw), lambda i, t: (i, 0, t)),
                pl.BlockSpec((C, 1), lambda i, t: (0, 0)),   # weight: resident
                pl.BlockSpec((C, 1), lambda i, t: (0, 0)),   # bias:   resident
            ],
            out_specs=pl.BlockSpec((bt, C, tile_hw), lambda i, t: (i, 0, t)),
        ),
        compiler_params=pltpu.CompilerParams(
            dimension_semantics=("parallel", "parallel"),
            vmem_limit_bytes=min(vmem_cap // 2, 96 << 20),
        ),
        cost_estimate=cost,
    )(x2, w2, b2)

    return out.reshape(B, C, H, W)


def _ref_ln2d(x, w, b, eps=1e-6):
    xf = x.astype(jnp.float32)
    u = xf.mean(axis=1, keepdims=True)
    d = xf - u
    s = (d * d).mean(axis=1, keepdims=True)
    y = d / jnp.sqrt(s + eps)
    y = w[None, :, None, None] * y + b[None, :, None, None]
    return y.astype(x.dtype)


if __name__ == "__main__":
    key = jax.random.PRNGKey(0)
    k0, k1, k2, k3 = jax.random.split(key, 4)

    # Primary small shape consistent with the module.
    B, C, H, W = 2, 4, 16, 16
    x = jax.random.normal(k0, (B, C, H, W), dtype=jnp.float32)
    weight = jnp.ones((C,), dtype=jnp.float32)   # nn.Parameter(torch.ones(C))
    bias = jnp.zeros((C,), dtype=jnp.float32)    # nn.Parameter(torch.zeros(C))
    out = jax.block_until_ready(layernorm2d(x, weight, bias, eps=1e-6))
    assert jnp.allclose(out, _ref_ln2d(x, weight, bias), atol=1e-5, rtol=1e-5)

    # Non-multiple-of-128 HW (56x56): exercises the masked-remainder tile path.
    x1 = jax.random.normal(k1, (2, 16, 56, 56), dtype=jnp.float32)
    w1 = jax.random.normal(k2, (16,), dtype=jnp.float32)
    b1 = jax.random.normal(k3, (16,), dtype=jnp.float32)
    out1 = jax.block_until_ready(layernorm2d(x1, w1, b1, eps=1e-6))
    assert jnp.allclose(out1, _ref_ln2d(x1, w1, b1), atol=1e-4, rtol=1e-4)

    # Tiny spatial (7x7) in bf16: lane-sparse single-block path.
    x2 = jax.random.normal(k1, (1, 8, 7, 7), dtype=jnp.bfloat16)
    w2 = jnp.ones((8,), dtype=jnp.float32)
    b2 = jnp.zeros((8,), dtype=jnp.float32)
    out2 = jax.block_until_ready(layernorm2d(x2, w2, b2, eps=1e-6))
    assert jnp.allclose(out2.astype(jnp.float32),
                        _ref_ln2d(x2, w2, b2).astype(jnp.float32),
                        atol=3e-2, rtol=3e-2)

    print("KERNEL_OK")
</pallas_src>

<mosaic_0001>
module attributes {stable_mosaic.version = 11 : i64} {
  func.func @_layernorm2d_kernel(%arg0: i32, %arg1: i32, %arg2: memref<1x4x256xf32, #tpu.memory_space<vmem>>, %arg3: memref<4x1xf32, #tpu.memory_space<vmem>>, %arg4: memref<4x1xf32, #tpu.memory_space<vmem>>, %arg5: memref<1x4x256xf32, #tpu.memory_space<vmem>>) attributes {dimension_semantics = [#tpu.dimension_semantics<parallel>, #tpu.dimension_semantics<parallel>], iteration_bounds = array<i64: 2, 1>, scalar_prefetch = 0 : i64, scratch_operands = 0 : i64, tpu.core_type = #tpu.core_type<tc>, window_params = [{transform_indices = @transform_0, window_bounds = array<i64: 1, 4, 256>}, {pipeline_mode = #tpu.pipeline_mode<synchronous>, transform_indices = @transform_1, window_bounds = array<i64: 4, 1>}, {pipeline_mode = #tpu.pipeline_mode<synchronous>, transform_indices = @transform_2, window_bounds = array<i64: 4, 1>}, {transform_indices = @transform_3, window_bounds = array<i64: 1, 4, 256>}]} {
    %c0 = arith.constant 0 : index
    %c0_0 = arith.constant 0 : index
    %c0_1 = arith.constant 0 : index
    %0 = vector.load %arg2[%c0, %c0_0, %c0_1] : memref<1x4x256xf32, #tpu.memory_space<vmem>>, vector<1x4x256xf32>
    %c0_2 = arith.constant 0 : index
    %c0_3 = arith.constant 0 : index
    %1 = vector.load %arg3[%c0_2, %c0_3] : memref<4x1xf32, #tpu.memory_space<vmem>>, vector<4x1xf32>
    %2 = vector.shape_cast %1 : vector<4x1xf32> to vector<1x4x1xf32>
    %c0_4 = arith.constant 0 : index
    %c0_5 = arith.constant 0 : index
    %3 = vector.load %arg4[%c0_4, %c0_5] : memref<4x1xf32, #tpu.memory_space<vmem>>, vector<4x1xf32>
    %4 = vector.shape_cast %3 : vector<4x1xf32> to vector<1x4x1xf32>
    %cst = arith.constant dense<0.000000e+00> : vector<1x256xf32>
    %5 = vector.multi_reduction <add>, %0, %cst [1] : vector<1x4x256xf32> to vector<1x256xf32>
    %6 = vector.shape_cast %5 : vector<1x256xf32> to vector<1x1x256xf32>
    %cst_6 = arith.constant 2.500000e-01 : f32
    %7 = vector.broadcast %cst_6 : f32 to vector<1x1x256xf32>
    %8 = arith.mulf %6, %7 : vector<1x1x256xf32>
    %9 = arith.mulf %0, %0 : vector<1x4x256xf32>
    %cst_7 = arith.constant dense<0.000000e+00> : vector<1x256xf32>
    %10 = vector.multi_reduction <add>, %9, %cst_7 [1] : vector<1x4x256xf32> to vector<1x256xf32>
    %11 = vector.shape_cast %10 : vector<1x256xf32> to vector<1x1x256xf32>
    %cst_8 = arith.constant 2.500000e-01 : f32
    %12 = vector.broadcast %cst_8 : f32 to vector<1x1x256xf32>
    %13 = arith.mulf %11, %12 : vector<1x1x256xf32>
    %14 = arith.mulf %8, %8 : vector<1x1x256xf32>
    %15 = arith.subf %13, %14 : vector<1x1x256xf32>
    %cst_9 = arith.constant 0.000000e+00 : f32
    %16 = vector.broadcast %cst_9 : f32 to vector<1x1x256xf32>
    %17 = arith.maximumf %15, %16 : vector<1x1x256xf32>
    %cst_10 = arith.constant 9.99999997E-7 : f32
    %18 = vector.broadcast %cst_10 : f32 to vector<1x1x256xf32>
    %19 = arith.addf %17, %18 : vector<1x1x256xf32>
    %20 = math.rsqrt %19 : vector<1x1x256xf32>
    %21 = vector.broadcast %8 : vector<1x1x256xf32> to vector<1x4x256xf32>
    %22 = arith.subf %0, %21 : vector<1x4x256xf32>
    %23 = vector.broadcast %2 : vector<1x4x1xf32> to vector<1x4x256xf32>
    %24 = vector.broadcast %20 : vector<1x1x256xf32> to vector<1x4x256xf32>
    %25 = arith.mulf %23, %24 : vector<1x4x256xf32>
    %26 = arith.mulf %22, %25 : vector<1x4x256xf32>
    %27 = vector.broadcast %4 : vector<1x4x1xf32> to vector<1x4x256xf32>
    %28 = arith.addf %26, %27 : vector<1x4x256xf32>
    %c0_11 = arith.constant 0 : index
    %c0_12 = arith.constant 0 : index
    %c0_13 = arith.constant 0 : index
    %29 = vector.load %arg5[%c0_11, %c0_12, %c0_13] : memref<1x4x256xf32, #tpu.memory_space<vmem>>, vector<1x4x256xf32>
    tpu.vector_store %arg5[%c0_11, %c0_12, %c0_13], %28 {strides = array<i32>} : memref<1x4x256xf32, #tpu.memory_space<vmem>>, vector<1x4x256xf32>,
    return
  }
  func.func @transform_0(%arg0: i32, %arg1: i32) -> (i32, i32, i32) {
    %c0_i32 = arith.constant 0 : i32
    %c0_i32_0 = arith.constant 0 : i32
    return %arg0, %c0_i32, %arg1 : i32, i32, i32
  }
  func.func @transform_1(%arg0: i32, %arg1: i32) -> (i32, i32) {
    %c0_i32 = arith.constant 0 : i32
    %c0_i32_0 = arith.constant 0 : i32
    %c0_i32_1 = arith.constant 0 : i32
    return %c0_i32, %c0_i32_0 : i32, i32
  }
  func.func @transform_2(%arg0: i32, %arg1: i32) -> (i32, i32) {
    %c0_i32 = arith.constant 0 : i32
    %c0_i32_0 = arith.constant 0 : i32
    %c0_i32_1 = arith.constant 0 : i32
    return %c0_i32, %c0_i32_0 : i32, i32
  }
  func.func @transform_3(%arg0: i32, %arg1: i32) -> (i32, i32, i32) {
    %c0_i32 = arith.constant 0 : i32
    %c0_i32_0 = arith.constant 0 : i32
    return %arg0, %c0_i32, %arg1 : i32, i32, i32
  }
}

</mosaic_0001>

<bundles_post_ra>
// kernel: tpu_custom_call.1
= control target key start
LH: loop header
LB: loop body
LE: loop exit
PB: predicated region body
PF: predicated region fallthrough
CT: control target
= control target key end

     0   :  { %8 = vsyncpa [#allocation3], 0  ;;  %s783_s0 = inlined_call_operand.hbm [shape: f32[2,4,256], index: 0, kind: input, shape index: {}]   ;;  %s784_s1 = inlined_call_operand.vmem [shape: f32[4,1], index: 1, kind: input, shape index: {}]   ;;  %s785_s2 = inlined_call_operand.vmem [shape: f32[4,1], index: 2, kind: input, shape index: {}]   ;;  %s786_s3 = inlined_call_operand.hbm [shape: f32[2,4,256], index: 3, kind: output, shape index: {}]  }
   0x1   :  { %10 = vsyncpa [#allocation3 + $0x1], 0 }
   0x2   :  { %11 = vsyncpa [#allocation4], 0 }
   0x3   :  { %13 = vsyncpa [#allocation4 + $0x1], 0  ;;  %s641_s12 = smov 0   ;;  %s643_s13 = smov 0  }
   0x4   :  { %s645_s14 = smov 0   ;;  %s647_s15 = smov 0  }
   0x5   :  { %s649_s16 = smov 0   ;;  %s651_s17 = smov 0  }
   0x6 LB: > { %s419_s18 = sadd.s32 4294967295, %s617_s17   ;;  %s420_s19 = sadd.s32 4294967294, %s617_s17   ;;  %s617_s17 = sphi %s651_s17, %s19_s17   ;;  %s613_s16 = sphi %s649_s16, %s795_s16   ;;  %s609_s15 = sphi %s647_s15, %s794_s15   ;;  %s605_s14 = sphi %s645_s14, %s793_s14   ;;  %s601_s13 = sphi %s643_s13, %s792_s13   ;;  %s597_s12 = sphi %s641_s12, %s791_s12  }
   0x7   : > { %s31_s20 = sadd.s32 1, %s613_s16  ;;  %s40_s21 = sadd.s32 1, %s605_s14 }
   0x8   : > { %p33_p0 = scmp.ge.s32.totalorder %s31_s20, 2  ;;  %p47_p1 = scmp.ne.s32.totalorder %s605_s14, %s601_s13 }
   0x9   : > { %p48_p2 = scmp.eq.s32.totalorder %s617_s17, 0  ;;  %p53_p3 = scmp.ne.s32.totalorder %s601_s13, %s597_s12 }
   0xa   : > { %s797_s20 = smov (%p33_p0, %s31_s20), 0  ;;  %p54_p5 = scmp.eq.s32.totalorder %s419_s18, 0 }
   0xb   : > { %p682_p4 = por %p48_p2, %p47_p1  ;;  %s35_s23 = ssub.s32 %s613_s16, %s797_s20 }
   0xc   : > { %p121_p6 = scmp.eq.s32.totalorder %s419_s18, 1  ;;  %p38_p7 = scmp.eq.s32.totalorder %s35_s23, 0 }
   0xd   : > { %p688_p8 = por %p54_p5, %p53_p3  ;;  %p127_p10 = scmp.eq.s32.totalorder %s420_s19, 1 }
   0xe   : > { %p692_p9 = por %p121_p6, %p47_p1  ;;  %p422_p12 = scmp.ge.s32.totalorder %s617_s17, 2 }
   0xf   : > { %s697_s26 = scalar_select %p38_p7, %s605_s14, %s40_s21  }
  0x10   : > { %p699_p11 = por %p127_p10, %p53_p3  ;;  %p448_p13 = scmp.lt.s32.totalorder %s617_s17, 2 }
  0x11   : > { %s153_s28 = sand.u32 1, %s605_s14   ;;  %s434_s30 = sshll.u32 %s613_s16, 3 }
  0x12   : > { %s423_s29 = sshll.u32 %s153_s28, 3  ;;  %s164_s6 = scalar_lea.hbm %s783_s0, %s434_s30 }
  0x13   : > { %s157_s7 = scalar_lea.vmem [#allocation2], %s423_s29  ;;  %s166_s9 = sshll.u32 %s164_s6, 4  ;;  %s167_s9 = int_to_ptr.hbm [resolvable:$true] %s166_s9 }
  0x14   : > { %s168_s8 = sshll.u32 %s157_s7, 4  ;;  %p441_p0 = pnand %p448_p13, %p682_p4  ;;  %s169_s8 = int_to_ptr.vmem [resolvable:$true] %s168_s8 }
  0x15   : > { %p426_p1 = scmp.ge.s32.totalorder %s617_s17, 1  ;;  %p173_p2 = scmp.lt.s32.totalorder %s617_s17, 3 }
  0x16   : > { %s154_s10 = scalar_lea.sflag [#allocation3], %s153_s28 }
  0x17   : > { %443 = dma.hbm_to_vmem [thread:$0]  (!%p441_p0), %s167_s9, 128, %s169_s8, %s154_s10  }
  0x18   : > { %p174_p3 = pnand %p426_p1, %p173_p2 }
  0x19   : > { %s715_s11 = sand.u32 (!%p174_p3), 1, %s601_s13  }
  0x1a   : > { %177 = sbr.rel (%p174_p3) target bundleno = 164 (0xa4), region = 32  ;;  %s427_s18 = sshll.u32 (!%p174_p3), %s715_s11, 3 }
  0x1b   : > { %s180_s19 = scalar_lea.sflag (!%p174_p3), [#allocation3], %s715_s11  ;;  %s183_s21 = scalar_lea.vmem (!%p174_p3), [#allocation2], %s427_s18 }
  0x1f   : > { %588 = dma.done.wait (%p688_p8), %s180_s19, 128  }
  0x20   : > { %590 = vsyncadd (%p688_p8), %s180_s19, 4294967168  ;;  %v619_v0 = vmov 0   ;;  %v210_v1 = vld [vmem:[%s784_s1] sm:$0xf]  ;;  %v731_v3 = vld [vmem:[%s183_s21] sm:$0xff]  ;;  %vm218_vm0 = vcmask 1043456  }
  0x21   : > { %500 = vset.pattern.permute.xlu0 %v619_v0  ;;  %v211_v2 = vld [vmem:[%s785_s2] sm:$0xf]  ;;  %213 = vst [vmem:[#allocation1] ss:$2 sm:$0xff] %v731_v3  ;;  %v235_v4 = vmul.f32 %v731_v3, %v731_v3  ;;  %s435_s24 = sshll.u32 %s609_s15, 3  ;;  %s206_s6 = scalar_lea.vmem [#allocation5], %s427_s18 }
  0x22   : > { %294 = vperm.xlu0 %500, %v210_v1   ;;  %s330_s5 = scalar_lea.hbm %s786_s3, %s435_s24  ;;  %s332_s7 = sshll.u32 %s206_s6, 4  ;;  %s333_s7 = int_to_ptr.vmem [resolvable:$true] %s332_s7 }
  0x23   : > { %s334_s8 = sshll.u32 %s330_s5, 4  ;;  %s317_s15 = scalar_lea.sflag [#allocation4], %s715_s11  ;;  %s335_s8 = int_to_ptr.hbm [resolvable:$true] %s334_s8 }
  0x24   : > { %s549_s9 = sshra.s32 %s335_s8, 4  ;;  %s555_s18 = scalar_lea.hbm %s786_s3, 16  ;;  %s550_s9 = int_to_ptr.hbm [resolvable:$true] %s549_s9 }
  0x25   : > { %s551_s10 = scalar_lea.hbm %s550_s9, 8  ;;  %p556_p7 = scmp.lt.s32.totalorder %s550_s9, %s786_s3 }
  0x26   : > { %p552_p4 = scmp.ne.s32.totalorder %s550_s9, %s551_s10  ;;  %p557_p8 = scmp.lt.s32.totalorder %s555_s18, %s551_s10 }
  0x28   : > { %v214_v5 = vld.sshfl [vmem:[#allocation1] sm:$0xff pattern:$0x75316420]  ;;  %v215_v6 = vld.sshfl [vmem:[#allocation1 + $0x8] sm:$0xff pattern:$0x75316420]  ;;  %p553_p5 = pnand %p552_p4, %p692_p9  ;;  %p558_p10 = por %p557_p8, %p556_p7 }
  0x29   : > { %237 = vst [vmem:[#allocation1] ss:$2 sm:$0xff] %v235_v4  ;;  %v219_v7 = vsel %vm218_vm0, %v214_v5, 0.0  ;;  %v226_v8 = vsel %vm218_vm0, %v215_v6, 0.0 }
  0x2a   : > { %307 = vperm.xlu0 %500, %v211_v2   ;;  %v220_v9 = vrot.slane %v219_v7, 4  ;;  %v227_v10 = vrot.slane %v226_v8, 4  ;;  %v620_v2 = vmov 839922192   ;;  %p554_p6 = pneg %p553_p5 }
  0x2b   : > { %v310_v4 = vunpack.c.l.s4 %v620_v2 }
  0x2c   : > { %v228_v14 = vadd.f32 %v227_v10, %v226_v8  ;;  %v221_v16 = vadd.f32 %v220_v9, %v219_v7  ;;  %p559_p13 = pnand %p558_p10, %p554_p6 }
  0x2d   : > { %v311_v8 = vunpack.c.0.s8 %v310_v4 }
  0x2e   : > { %v229_v19 = vrot.slane %v228_v14, 2  ;;  %v222_v21 = vrot.slane %v221_v16, 2 }
  0x30   : > { %v238_v11 = vld.sshfl [vmem:[#allocation1] sm:$0xff pattern:$0x75316420]  ;;  %v239_v12 = vld.sshfl [vmem:[#allocation1 + $0x8] sm:$0xff pattern:$0x75316420]  ;;  %v230_v23 = vadd.f32 %v229_v19, %v228_v14  ;;  %v223_v25 = vadd.f32 %v222_v21, %v221_v16 }
  0x31   : > { %v242_v13 = vsel %vm218_vm0, %v238_v11, 0.0  ;;  %v249_v15 = vsel %vm218_vm0, %v239_v12, 0.0 }
  0x32   : > { %v243_v17 = vrot.slane %v242_v13, 4  ;;  %v250_v18 = vrot.slane %v249_v15, 4  ;;  %v231_v27 = vrot.slane %v230_v23, 1  ;;  %v224_v29 = vrot.slane %v223_v25, 1 }
  0x34   : > { %v251_v20 = vadd.f32 %v250_v18, %v249_v15  ;;  %v244_v22 = vadd.f32 %v243_v17, %v242_v13  ;;  %v232_v31 = vadd.f32 %v231_v27, %v230_v23  ;;  %v225_v33 = vadd.f32 %v224_v29, %v223_v25 }
  0x36   : > { %v252_v24 = vrot.slane %v251_v20, 2  ;;  %v245_v26 = vrot.slane %v244_v22, 2  ;;  %v234_v35 = vmul.f32 0.25, %v232_v31  ;;  %v233_v37 = vmul.f32 0.25, %v225_v33 }
  0x38   : > { %v253_v28 = vadd.f32 %v252_v24, %v251_v20  ;;  %v246_v30 = vadd.f32 %v245_v26, %v244_v22  ;;  %v259_v40 = vmul.f32 %v234_v35, %v234_v35  ;;  %v258_v42 = vmul.f32 %v233_v37, %v233_v37 }
  0x39   : > { %v288_v62 = vrot.slane %v234_v35, 4 }
  0x3a   : > { %v254_v32 = vrot.slane %v253_v28, 1  ;;  %v247_v34 = vrot.slane %v246_v30, 1 }
  0x3b   : > { %v289_v5 = vsel %vm218_vm0, %v233_v37, %v288_v62 }
  0x3c   : > { %v255_v36 = vadd.f32 %v254_v32, %v253_v28  ;;  %v248_v38 = vadd.f32 %v247_v34, %v246_v30  ;;  %v291_v9 = vsub.f32 %v731_v3, %v289_v5 }
  0x3e   : > { %v257_v39 = vmul.f32 0.25, %v255_v36  ;;  %v256_v41 = vmul.f32 0.25, %v248_v38 }
  0x40   : > { %v261_v43 = vsub.f32 %v257_v39, %v259_v40  ;;  %v260_v44 = vsub.f32 %v256_v41, %v258_v42 }
  0x42   : > { %v263_v45 = vmax.f32 %v261_v43, 0.0  ;;  %v262_v46 = vmax.f32 %v260_v44, 0.0 }
  0x44   : > { %v265_v47 = vadd.f32 1e-06, %v263_v45  ;;  %v264_v48 = vadd.f32 1e-06, %v262_v46 }
  0x46   : > { %501 = vrsqrt.f32 %v265_v47  ;;  %vm282_vm1 = vweird.f32 %v265_v47  ;;  %vm272_vm3 = vweird.f32 %v264_v48 }
  0x47   : > { %503 = vrsqrt.f32 %v264_v48 }
  0x4c   : > { %v502_v49 = vpop.eup %501 }
  0x4d   : > { %v504_v50 = vpop.eup %503  ;;  %v277_v51 = vmul.f32 %v502_v49, %v265_v47  ;;  %vm283_vm2 = vweird.f32 %v502_v49 }
  0x4e   : > { %v267_v52 = vmul.f32 %v504_v50, %v264_v48  ;;  %vm273_vm4 = vweird.f32 %v504_v50  ;;  %vm284_vm5 = vmor %vm282_vm1, %vm283_vm2 }
  0x4f   : > { %v278_v53 = vmul.f32 %v502_v49, %v277_v51  ;;  %vm274_vm6 = vmor %vm272_vm3, %vm273_vm4 }
  0x50   : > { %v268_v54 = vmul.f32 %v504_v50, %v267_v52 }
  0x51   : > { %v279_v55 = vmul.f32 0.5, %v278_v53 }
  0x52   : > { %v269_v56 = vmul.f32 0.5, %v268_v54 }
  0x53   : > { %v280_v57 = vsub.f32 1.5, %v279_v55 }
  0x54   : > { %v270_v58 = vsub.f32 1.5, %v269_v56 }
  0x55   : > { %v281_v59 = vmul.f32 %v502_v49, %v280_v57 }
  0x56   : > { %v271_v60 = vmul.f32 %v504_v50, %v270_v58 }
  0x57   : > { %v285_v61 = vsel %vm284_vm5, %v502_v49, %v281_v59 }
  0x58   : > { %v275_v0 = vsel %vm274_vm6, %v504_v50, %v271_v60 }
  0x94   : > { %v295_v63 = vpop.permute.xlu0 %294 }
  0x95   : > { %v298_v1 = vmul.f32 %v295_v63, %v285_v61  ;;  %v297_v7 = vmul.f32 %v295_v63, %v275_v0 }
  0x97   : > { %v301_v6 = vrot.slane %v298_v1, 4 }
  0x99   : > { %v302_v10 = vsel %vm218_vm0, %v297_v7, %v301_v6 }
  0x9a   : > { %v304_v12 = vmul.f32 %v302_v10, %v291_v9 }
  0x9c   : > { %v308_v11 = vpop.permute.xlu0 %307 }
  0x9d   : > { %v312_v13 = vperm.slane %v308_v11, %v311_v8 }
  0x9f   : > { %v314_v14 = vadd.f32 %v312_v13, %v304_v12 }
  0xa1   : > { %315 = vst [vmem:[%s206_s6] sm:$0xff] %v314_v14 }
  0xa2   : > { %562 = shalt.err (!%p559_p13)
}
  0xa3   : > { %438 = dma.vmem_to_hbm [thread:$0]  (%p692_p9), %s333_s7, 128, %s335_s8, %s317_s15  }
  0xa4 PF: > { %s346_s11 = sand.u32 1, %s597_s12   ;;  %p445_p0 = pnand %p422_p12, %p699_p11 }
  0xa5   : > { %s347_s28 = scalar_lea.sflag [#allocation4], %s346_s11 }
  0xa6   : > { %p446_p1 = pneg %p445_p0 }
  0xa8   : > { %592 = dma.done.wait (%p446_p1), %s347_s28, 128  }
  0xa9   : > { %594 = vsyncadd (%p446_p1), %s347_s28, 4294967168  ;;  %s19_s17 = sadd.s32 1, %s617_s17   ;;  %s791_s12 = smov %s601_s13 }
  0xaa   : > { %p16_p2 = scmp.ge.s32.totalorder %s19_s17, 4   ;;  %s792_s13 = smov %s605_s14 }
  0xab   : > { %s793_s14 = smov %s697_s26  ;;  %s794_s15 = smov %s613_s16 }
  0xac   : > { %s795_s16 = smov %s797_s20  ;;  %18 = sbr.rel (!%p16_p2) target bundleno = 6 (0x6), region = 77 }
  0xb1   :  { %353 = vsyncpa [#allocation3], 1 }
  0xb2   :  { %355 = vsyncpa [#allocation3 + $0x1], 1 }
  0xb3   :  { %356 = vsyncpa [#allocation4], 1 }
  0xb4   :  { %358 = vsyncpa [#allocation4 + $0x1], 1 }

</bundles_post_ra>
